<compile_context>
chip_gen: v7x
topology: tpu7x:2x2x1
jax: 0.10.0
libtpu: 0.0.40
codegen_flags: <defaults>
</compile_context>

<pallas_src>
import jax
import jax.numpy as jnp
from jax.experimental import pallas as pl
from jax.experimental.pallas import tpu as pltpu

D_EMBEDDINGS = 50
D_IN = D_EMBEDDINGS * 2      # 100
D_HID = 256
D_OUT = 1


def dan_kernel(x_ref, w1_ref, b1_ref, w2_ref, b2_ref, w3t_ref, b3_ref, o_ref):
    # x tile: (TILE_B, 100) f32 -> bf16 cast in-kernel (VPU slack; no HBM round trip).
    x = x_ref[...].astype(jnp.bfloat16)

    # Layer 1: (TILE_B, 100) @ (100, 256) -> f32 accumulate, ReLU, bf16 for next MXU pass.
    h1 = jnp.dot(x, w1_ref[...], preferred_element_type=jnp.float32)
    h1 = jnp.maximum(h1 + b1_ref[...], 0.0).astype(jnp.bfloat16)

    # Layer 2: (TILE_B, 256) @ (256, 256) -> f32 accumulate, ReLU.
    h2 = jnp.dot(h1, w2_ref[...], preferred_element_type=jnp.float32)
    h2 = jnp.maximum(h2 + b2_ref[...], 0.0)

    # Output layer, compacted: transpose h2 (XLU, idle slot) and contract with
    # w3^T (1, 256) on the MXU -> lane-dense (1, TILE_B) logits row.
    h2_t = h2.T.astype(jnp.bfloat16)                                   # (256, TILE_B)
    logits = jnp.dot(w3t_ref[...], h2_t,
                     preferred_element_type=jnp.float32)               # (1, TILE_B)

    # b3 add + sigmoid only on live data (1 row instead of 128 padded columns).
    out = jax.nn.sigmoid(logits + b3_ref[...])                         # (1, TILE_B) f32
    o_ref[...] = out.reshape(o_ref.shape).astype(o_ref.dtype)


def _pick_tiling(batch):
    """Return (tile_b, b_pad).

    Tiles are multiples of 128 (lane-dense compacted output), up to 512 rows,
    with >= 2 grid steps whenever the padded batch allows it (v7x megacore).
    """
    b_pad = max(128, pl.cdiv(batch, 128) * 128)
    if b_pad == 128:
        return 128, 128
    for tile in (512, 384, 256, 128):
        if b_pad % tile == 0 and b_pad // tile >= 2:
            return tile, b_pad
    return 128, b_pad  # unreachable for b_pad a multiple of 128; kept for safety


def prepare_params(p):
    """Cast logical f32 params (weights stored (in, out)) for the kernel."""
    return dict(
        w1=p["w1"].astype(jnp.bfloat16),        # (100, 256)
        b1=p["b1"],                              # (1, 256) f32
        w2=p["w2"].astype(jnp.bfloat16),        # (256, 256)
        b2=p["b2"],                              # (1, 256) f32
        w3t=p["w3"].T.astype(jnp.bfloat16),     # (1, 256)  (w3 stored (256, 1))
        b3=p["b3"],                              # (1, 1) f32
    )


def dan_forward(x, kp):
    """x: (B, 100) float32. kp: prepared (bf16) kernel params. Returns (B, 1) f32."""
    B = x.shape[0]
    tile_b, b_pad = _pick_tiling(B)
    if b_pad != B:
        x = jnp.pad(x, ((0, b_pad - B), (0, 0)))   # batch axis only; no cast round trip
    num_tiles = b_pad // tile_b

    const = lambda i: (0, 0)   # weights / biases: same block every step -> VMEM resident

    out = pl.pallas_call(
        dan_kernel,
        out_shape=jax.ShapeDtypeStruct((num_tiles, 1, tile_b), jnp.float32),
        grid_spec=pltpu.PrefetchScalarGridSpec(
            num_scalar_prefetch=0,
            grid=(num_tiles,),
            in_specs=[
                pl.BlockSpec((tile_b, D_IN), lambda i: (i, 0)),   # x tile (f32)
                pl.BlockSpec((D_IN, D_HID), const),               # w1  (bf16)
                pl.BlockSpec((1, D_HID), const),                  # b1  (f32)
                pl.BlockSpec((D_HID, D_HID), const),              # w2  (bf16)
                pl.BlockSpec((1, D_HID), const),                  # b2  (f32)
                pl.BlockSpec((1, D_HID), const),                  # w3^T (bf16)
                pl.BlockSpec((1, 1), const),                      # b3  (f32)
            ],
            out_specs=pl.BlockSpec((1, 1, tile_b), lambda i: (i, 0, 0)),
        ),
        compiler_params=pltpu.CompilerParams(
            dimension_semantics=("parallel",),     # megacore-shard batch on v7x
        ),
    )(x, kp["w1"], kp["b1"], kp["w2"], kp["b2"], kp["w3t"], kp["b3"])

    return out.reshape(b_pad, 1)[:B]


def init_params(key):
    """torch.nn.Linear-style init (U[-1/sqrt(in), 1/sqrt(in)]); weights stored (in, out)."""
    ks = jax.random.split(key, 6)

    def lin(kw, kb, fan_in, fan_out):
        bound = 1.0 / jnp.sqrt(jnp.float32(fan_in))
        w = jax.random.uniform(kw, (fan_in, fan_out), jnp.float32, -bound, bound)
        b = jax.random.uniform(kb, (1, fan_out), jnp.float32, -bound, bound)
        return w, b

    w1, b1 = lin(ks[0], ks[1], D_IN, D_HID)
    w2, b2 = lin(ks[2], ks[3], D_HID, D_HID)
    w3, b3 = lin(ks[4], ks[5], D_HID, D_OUT)
    return dict(w1=w1, b1=b1, w2=w2, b2=b2, w3=w3, b3=b3)


def dan_forward_ref(x, p):
    h1 = jnp.maximum(x @ p["w1"] + p["b1"], 0.0)
    h2 = jnp.maximum(h1 @ p["w2"] + p["b2"], 0.0)
    return jax.nn.sigmoid(h2 @ p["w3"] + p["b3"])


if __name__ == "__main__":
    key = jax.random.PRNGKey(0)
    k_params, k_x1, k_x2 = jax.random.split(key, 3)
    params = init_params(k_params)
    kparams = prepare_params(params)

    # Small single-tile case (B=8 -> padded to one 128-row tile).
    B1 = 8
    x1 = jax.random.normal(k_x1, (B1, D_IN), jnp.float32)   # (8, 100)
    out1 = jax.block_until_ready(dan_forward(x1, kparams))
    ref1 = jax.block_until_ready(dan_forward_ref(x1, params))
    assert out1.shape == (B1, D_OUT)
    assert jnp.allclose(out1, ref1, atol=2e-2, rtol=2e-2)

    # Multi-tile case exercising the batch grid + padding path.
    B2 = 300
    x2 = jax.random.normal(k_x2, (B2, D_IN), jnp.float32)   # (300, 100)
    out2 = jax.block_until_ready(dan_forward(x2, kparams))
    ref2 = jax.block_until_ready(dan_forward_ref(x2, params))
    assert out2.shape == (B2, D_OUT)
    assert jnp.allclose(out2, ref2, atol=2e-2, rtol=2e-2)

    print("KERNEL_OK")
</pallas_src>

<mosaic_0001>
module attributes {stable_mosaic.version = 11 : i64} {
  func.func @dan_kernel(%arg0: i32, %arg1: memref<128x100xf32, #tpu.memory_space<vmem>>, %arg2: memref<100x256xbf16, #tpu.memory_space<vmem>>, %arg3: memref<1x256xf32, #tpu.memory_space<vmem>>, %arg4: memref<256x256xbf16, #tpu.memory_space<vmem>>, %arg5: memref<1x256xf32, #tpu.memory_space<vmem>>, %arg6: memref<1x256xbf16, #tpu.memory_space<vmem>>, %arg7: memref<1x1xf32, #tpu.memory_space<vmem>>, %arg8: memref<1x1x128xf32, #tpu.memory_space<vmem>>) attributes {dimension_semantics = [#tpu.dimension_semantics<parallel>], iteration_bounds = array<i64: 1>, scalar_prefetch = 0 : i64, scratch_operands = 0 : i64, tpu.core_type = #tpu.core_type<tc>, window_params = [{transform_indices = @transform_0, window_bounds = array<i64: 128, 100>}, {pipeline_mode = #tpu.pipeline_mode<synchronous>, transform_indices = @transform_1, window_bounds = array<i64: 100, 256>}, {pipeline_mode = #tpu.pipeline_mode<synchronous>, transform_indices = @transform_2, window_bounds = array<i64: 1, 256>}, {pipeline_mode = #tpu.pipeline_mode<synchronous>, transform_indices = @transform_3, window_bounds = array<i64: 256, 256>}, {pipeline_mode = #tpu.pipeline_mode<synchronous>, transform_indices = @transform_4, window_bounds = array<i64: 1, 256>}, {pipeline_mode = #tpu.pipeline_mode<synchronous>, transform_indices = @transform_5, window_bounds = array<i64: 1, 256>}, {pipeline_mode = #tpu.pipeline_mode<synchronous>, transform_indices = @transform_6, window_bounds = array<i64: 1, 1>}, {transform_indices = @transform_7, window_bounds = array<i64: 1, 1, 128>}]} {
    %c0 = arith.constant 0 : index
    %c0_0 = arith.constant 0 : index
    %0 = vector.load %arg1[%c0, %c0_0] : memref<128x100xf32, #tpu.memory_space<vmem>>, vector<128x100xf32>
    %1 = arith.truncf %0 : vector<128x100xf32> to vector<128x100xbf16>
    %c0_1 = arith.constant 0 : index
    %c0_2 = arith.constant 0 : index
    %2 = vector.load %arg2[%c0_1, %c0_2] : memref<100x256xbf16, #tpu.memory_space<vmem>>, vector<100x256xbf16>
    %cst = arith.constant dense<0.000000e+00> : vector<128x256xf32>
    %3 = tpu.matmul %1, %2, %cst {dimension_numbers = #tpu.dot_dimension_numbers<[1], [0], [0], [1], [0, 0, 1, 1], [], []>} : vector<128x100xbf16>, vector<100x256xbf16>, vector<128x256xf32> -> vector<128x256xf32>
    %c0_3 = arith.constant 0 : index
    %c0_4 = arith.constant 0 : index
    %4 = vector.load %arg3[%c0_3, %c0_4] : memref<1x256xf32, #tpu.memory_space<vmem>>, vector<1x256xf32>
    %5 = vector.broadcast %4 : vector<1x256xf32> to vector<128x256xf32>
    %6 = arith.addf %3, %5 : vector<128x256xf32>
    %cst_5 = arith.constant 0.000000e+00 : f32
    %7 = vector.broadcast %cst_5 : f32 to vector<128x256xf32>
    %8 = arith.maximumf %6, %7 : vector<128x256xf32>
    %9 = arith.truncf %8 : vector<128x256xf32> to vector<128x256xbf16>
    %c0_6 = arith.constant 0 : index
    %c0_7 = arith.constant 0 : index
    %10 = vector.load %arg4[%c0_6, %c0_7] : memref<256x256xbf16, #tpu.memory_space<vmem>>, vector<256x256xbf16>
    %cst_8 = arith.constant dense<0.000000e+00> : vector<128x256xf32>
    %11 = tpu.matmul %9, %10, %cst_8 {dimension_numbers = #tpu.dot_dimension_numbers<[1], [0], [0], [1], [0, 0, 1, 1], [], []>} : vector<128x256xbf16>, vector<256x256xbf16>, vector<128x256xf32> -> vector<128x256xf32>
    %c0_9 = arith.constant 0 : index
    %c0_10 = arith.constant 0 : index
    %12 = vector.load %arg5[%c0_9, %c0_10] : memref<1x256xf32, #tpu.memory_space<vmem>>, vector<1x256xf32>
    %13 = vector.broadcast %12 : vector<1x256xf32> to vector<128x256xf32>
    %14 = arith.addf %11, %13 : vector<128x256xf32>
    %cst_11 = arith.constant 0.000000e+00 : f32
    %15 = vector.broadcast %cst_11 : f32 to vector<128x256xf32>
    %16 = arith.maximumf %14, %15 : vector<128x256xf32>
    %17 = tpu.transpose %16, [1, 0] : vector<128x256xf32> -> vector<256x128xf32>
    %18 = arith.truncf %17 : vector<256x128xf32> to vector<256x128xbf16>
    %c0_12 = arith.constant 0 : index
    %c0_13 = arith.constant 0 : index
    %19 = vector.load %arg6[%c0_12, %c0_13] : memref<1x256xbf16, #tpu.memory_space<vmem>>, vector<1x256xbf16>
    %cst_14 = arith.constant dense<0.000000e+00> : vector<1x128xf32>
    %20 = tpu.matmul %19, %18, %cst_14 {dimension_numbers = #tpu.dot_dimension_numbers<[1], [0], [0], [1], [0, 0, 1, 1], [], []>} : vector<1x256xbf16>, vector<256x128xbf16>, vector<1x128xf32> -> vector<1x128xf32>
    %c0_15 = arith.constant 0 : index
    %c0_16 = arith.constant 0 : index
    %21 = vector.load %arg7[%c0_15, %c0_16] : memref<1x1xf32, #tpu.memory_space<vmem>>, vector<1x1xf32>
    %22 = vector.broadcast %21 : vector<1x1xf32> to vector<1x128xf32>
    %23 = arith.addf %20, %22 : vector<1x128xf32>
    %24 = arith.negf %23 : vector<1x128xf32>
    %25 = math.exp %24 : vector<1x128xf32>
    %cst_17 = arith.constant 1.000000e+00 : f32
    %26 = vector.broadcast %cst_17 : f32 to vector<1x128xf32>
    %27 = arith.addf %26, %25 : vector<1x128xf32>
    %28 = arith.divf %26, %27 : vector<1x128xf32>
    %29 = vector.shape_cast %28 : vector<1x128xf32> to vector<1x1x128xf32>
    %c0_18 = arith.constant 0 : index
    %c0_19 = arith.constant 0 : index
    %c0_20 = arith.constant 0 : index
    %30 = vector.load %arg8[%c0_18, %c0_19, %c0_20] : memref<1x1x128xf32, #tpu.memory_space<vmem>>, vector<1x1x128xf32>
    tpu.vector_store %arg8[%c0_18, %c0_19, %c0_20], %29 {strides = array<i32>} : memref<1x1x128xf32, #tpu.memory_space<vmem>>, vector<1x1x128xf32>,
    return
  }
  func.func @transform_0(%arg0: i32) -> (i32, i32) {
    %c0_i32 = arith.constant 0 : i32
    %c0_i32_0 = arith.constant 0 : i32
    return %arg0, %c0_i32 : i32, i32
  }
  func.func @transform_1(%arg0: i32) -> (i32, i32) {
    %c0_i32 = arith.constant 0 : i32
    %c0_i32_0 = arith.constant 0 : i32
    %c0_i32_1 = arith.constant 0 : i32
    return %c0_i32, %c0_i32_0 : i32, i32
  }
  func.func @transform_2(%arg0: i32) -> (i32, i32) {
    %c0_i32 = arith.constant 0 : i32
    %c0_i32_0 = arith.constant 0 : i32
    %c0_i32_1 = arith.constant 0 : i32
    return %c0_i32, %c0_i32_0 : i32, i32
  }
  func.func @transform_3(%arg0: i32) -> (i32, i32) {
    %c0_i32 = arith.constant 0 : i32
    %c0_i32_0 = arith.constant 0 : i32
    %c0_i32_1 = arith.constant 0 : i32
    return %c0_i32, %c0_i32_0 : i32, i32
  }
  func.func @transform_4(%arg0: i32) -> (i32, i32) {
    %c0_i32 = arith.constant 0 : i32
    %c0_i32_0 = arith.constant 0 : i32
    %c0_i32_1 = arith.constant 0 : i32
    return %c0_i32, %c0_i32_0 : i32, i32
  }
  func.func @transform_5(%arg0: i32) -> (i32, i32) {
    %c0_i32 = arith.constant 0 : i32
    %c0_i32_0 = arith.constant 0 : i32
    %c0_i32_1 = arith.constant 0 : i32
    return %c0_i32, %c0_i32_0 : i32, i32
  }
  func.func @transform_6(%arg0: i32) -> (i32, i32) {
    %c0_i32 = arith.constant 0 : i32
    %c0_i32_0 = arith.constant 0 : i32
    %c0_i32_1 = arith.constant 0 : i32
    return %c0_i32, %c0_i32_0 : i32, i32
  }
  func.func @transform_7(%arg0: i32) -> (i32, i32, i32) {
    %c0_i32 = arith.constant 0 : i32
    %c0_i32_0 = arith.constant 0 : i32
    %c0_i32_1 = arith.constant 0 : i32
    return %arg0, %c0_i32, %c0_i32_0 : i32, i32, i32
  }
}

</mosaic_0001>

<bundles_post_ra>
// kernel: tpu_custom_call.1
= control target key start
LH: loop header
LB: loop body
LE: loop exit
PB: predicated region body
PF: predicated region fallthrough
CT: control target
= control target key end

     0   :  { %s1482_s0 = inlined_call_operand.vmem [shape: f32[128,100], index: 0, kind: input, shape index: {}]   ;;  %s1483_s1 = inlined_call_operand.vmem [shape: bf16[100,256], index: 1, kind: input, shape index: {}]   ;;  %s1484_s2 = inlined_call_operand.vmem [shape: f32[1,256], index: 2, kind: input, shape index: {}]   ;;  %s1485_s3 = inlined_call_operand.hbm [shape: bf16[256,256], index: 3, kind: input, shape index: {}]   ;;  %s1486_s4 = inlined_call_operand.vmem [shape: f32[1,256], index: 4, kind: input, shape index: {}]   ;;  %s1487_s5 = inlined_call_operand.vmem [shape: bf16[1,256], index: 5, kind: input, shape index: {}]   ;;  %s1488_s6 = inlined_call_operand.<no memory space> [shape: f32[1,1], index: 6, kind: input, shape index: {}]   ;;  %s1489_s7 = inlined_call_operand.hbm [shape: f32[1,1,128], index: 7, kind: output, shape index: {}]  }
   0x1   :  { %v12_v0 = vstv %s1488_s6 }
   0x2   :  { %13 = vst [vmem:[#allocation2] sm:$0x1] %v12_v0 }
   0x3   :  { %14 = vsyncpa [#allocation4], 0 }
   0x4   :  { %15 = vsyncpa [#allocation5], 0  ;;  %s1197_s26 = smov [#allocation3]   ;;  %s1149_s30 = scalar_lea.hbm %s1485_s3, 4096 }
   0x5   :  { %s27_s27 = sshll.u32 %s1197_s26, 4  ;;  %p1150_p0 = scmp.ne.s32.totalorder %s1485_s3, %s1149_s30  ;;  %s28_s27 = int_to_ptr.vmem [resolvable:$true] %s27_s27 }
   0x6   :  { %p1153_p1 = scmp.lt.u32.totalorder %s1149_s30, %s1485_s3 }
   0x8   :  { %p1155_p2 = pnand %p1153_p1, %p1150_p0 }
   0xa   :  { %1158 = shalt.err (!%p1155_p2)
}
   0xb   :  { %s1159_s6 = scalar_lea.vmem %s28_s27, 4096  ;;  %p1164_p4 = scmp.lt.s32.totalorder %s28_s27, %s28_s27 }
   0xc   :  { %p1160_p3 = scmp.ne.s32.totalorder %s28_s27, %s1159_s6  ;;  %p1165_p5 = scmp.lt.s32.totalorder %s1159_s6, %s1159_s6 }
   0xe   :  { %p1166_p6 = por %p1165_p5, %p1164_p4 }
  0x10   :  { %p1167_p7 = pnand %p1166_p6, %p1160_p3 }
  0x12   :  { %1170 = shalt.err (!%p1167_p7)
}
  0x13   :  { %s1198_s12 = smov 128   ;;  %s1199_s13 = smov 8  }
  0x14   :  { %33 = dma.hbm_to_vmem [thread:$0]  %s1485_s3, 4096, %s28_s27, [#allocation4], %s1198_s12, %s1198_s12, %s1199_s13  }
  0x15   :  { %1193 = dma.done.wait [#allocation4], 4096  }
  0x16   :  { %1194 = vsyncadd [#allocation4], 4294963200  ;;  %v1200_v1 = vmov 0   ;;  %v1077_v2 = vld [vmem:[%s1483_s1 + $0x4] ss:$8 sps:$4 sm:$0xff]   ;;  %vm183_vm0 = vcmask 1041408  }
  0x17   :  { %222 = vmatprep.mubr.bf16.mxu0 %v1200_v1  ;;  %1075 = vset.pattern.permute.xlu1 %v1200_v1  ;;  %v1079_v3 = vld [vmem:[%s1483_s1] ss:$8 sps:$4 sm:$0xff]   ;;  %v1080_v4 = vld [vmem:[%s1483_s1 + $0x14] ss:$8 sps:$4 sm:$0xff]   ;;  %v1082_v5 = vld [vmem:[%s1483_s1 + $0x10] ss:$8 sps:$4 sm:$0xff]  }
  0x18   :  { %190 = vmatprep.subr.bf16.mxu0 %v1077_v2  ;;  %v1083_v6 = vld [vmem:[%s1483_s1 + $0x24] ss:$8 sps:$4 sm:$0xff]   ;;  %v1085_v7 = vld [vmem:[%s1483_s1 + $0x20] ss:$8 sps:$4 sm:$0xff]   ;;  %v1086_v8 = vld [vmem:[%s1483_s1 + $0x34] ss:$8 sps:$4 sm:$0xff]  }
  0x19   :  { %191 = vmatpush1.bf16.msra.mxu0 %v1079_v3  ;;  %v1088_v9 = vld [vmem:[%s1483_s1 + $0x30] ss:$8 sps:$4 sm:$0xff]   ;;  %v1089_v10 = vld [vmem:[%s1483_s1 + $0x44] ss:$8 sps:$4 sm:$0xff]   ;;  %v1091_v11 = vld [vmem:[%s1483_s1 + $0x40] ss:$8 sps:$4 sm:$0xff]  }
  0x1a   :  { %192 = vmatprep.subr.bf16.mxu0 %v1080_v4  ;;  %v1097_v12 = vld [vmem:[#allocation3 + $0x4] ss:$8 sps:$4 sm:$0xff]   ;;  %v1099_v13 = vld [vmem:[#allocation3] ss:$8 sps:$4 sm:$0xff]   ;;  %v1100_v14 = vld [vmem:[#allocation3 + $0x14] ss:$8 sps:$4 sm:$0xff]  }
  0x1b   :  { %v1092_v15 = vld [vmem:[%s1483_s1 + $0x54] ss:$8 sps:$4 sm:$0xff]   ;;  %555 = vmatprep.subr.bf16.mxu1 %v1097_v12  ;;  %v80_v16 = vld [vmem:[%s1483_s1 + $0x60] sm:$0x33]  ;;  %v1094_v19 = vld [vmem:[%s1483_s1 + $0x50] ss:$8 sps:$4 sm:$0xff]  }
  0x1c   :  { %556 = vmatpush1.bf16.msra.mxu1 %v1099_v13  ;;  %v1102_v17 = vld [vmem:[#allocation3 + $0x10] ss:$8 sps:$4 sm:$0xff]   ;;  %v1103_v18 = vld [vmem:[#allocation3 + $0x24] ss:$8 sps:$4 sm:$0xff]   ;;  %v891_v20 = vcombine.high %v80_v16, %v80_v16  ;;  %v890_v21 = vcombine.low %v80_v16, %v80_v16  ;;  %v1105_v22 = vld [vmem:[#allocation3 + $0x20] ss:$8 sps:$4 sm:$0xff]  }
  0x1d   :  { %193 = vmatpush1.bf16.msra.mxu0 %v1082_v5  ;;  %557 = vmatprep.subr.bf16.mxu1 %v1100_v14  ;;  %v44_v23 = vld [vmem:[%s1482_s0] sm:$0xff]  ;;  %v45_v25 = vld [vmem:[%s1482_s0 + $0x8] sm:$0xff]  ;;  %v1108_v27 = vld [vmem:[#allocation3 + $0x30] ss:$8 sps:$4 sm:$0xff]   ;;  %vm158_vm1 = vcmask 818176  }
  0x1e   :  { %194 = vmatprep.subr.bf16.mxu0 %v1083_v6  ;;  %v1106_v24 = vld [vmem:[#allocation3 + $0x34] ss:$8 sps:$4 sm:$0xff]   ;;  %v185_v26 = vsel %vm183_vm0, %v890_v21, 0  ;;  %v60_v28 = vpack.c.bf16 %v45_v25, %v44_v23  ;;  %v1109_v29 = vld [vmem:[#allocation3 + $0x44] ss:$8 sps:$4 sm:$0xff]  }
  0x1f   :  { %v1111_v30 = vld [vmem:[#allocation3 + $0x40] ss:$8 sps:$4 sm:$0xff]   ;;  %v46_v31 = vld [vmem:[%s1482_s0 + $0x10] sm:$0xff]  ;;  %v47_v33 = vld [vmem:[%s1482_s0 + $0x18] sm:$0xff] }
  0x20   :  { %558 = vmatpush1.bf16.msra.mxu1 %v1102_v17  ;;  %v1112_v32 = vld [vmem:[#allocation3 + $0x54] ss:$8 sps:$4 sm:$0xff]   ;;  %v1114_v34 = vld [vmem:[#allocation3 + $0x50] ss:$8 sps:$4 sm:$0xff]   ;;  %v61_v35 = vpack.c.bf16 %v47_v33, %v46_v31  ;;  %v1115_v36 = vld [vmem:[#allocation3 + $0x64] ss:$8 sps:$4 sm:$0xff]  }
  0x21   :  { %195 = vmatpush1.bf16.msra.mxu0 %v1085_v7  ;;  %559 = vmatprep.subr.bf16.mxu1 %v1103_v18  ;;  %v1117_v37 = vld [vmem:[#allocation3 + $0x60] ss:$8 sps:$4 sm:$0xff]   ;;  %v1118_v38 = vld [vmem:[#allocation3 + $0x74] ss:$8 sps:$4 sm:$0xff]   ;;  %v1120_v41 = vld [vmem:[#allocation3 + $0x70] ss:$8 sps:$4 sm:$0xff]  }
  0x22   :  { %196 = vmatprep.subr.bf16.mxu0 %v1086_v8  ;;  %v48_v39 = vld [vmem:[%s1482_s0 + $0x20] sm:$0xff]  ;;  %v49_v40 = vld [vmem:[%s1482_s0 + $0x28] sm:$0xff]  ;;  %v50_v46 = vld [vmem:[%s1482_s0 + $0x30] sm:$0xff] }
  0x23   :  { %v62_v42 = vpack.c.bf16 %v49_v40, %v48_v39  ;;  %v1121_v43 = vld [vmem:[#allocation3 + $0x84] ss:$8 sps:$4 sm:$0xff]   ;;  %v1123_v44 = vld [vmem:[#allocation3 + $0x80] ss:$8 sps:$4 sm:$0xff]   ;;  %v1124_v45 = vld [vmem:[#allocation3 + $0x94] ss:$8 sps:$4 sm:$0xff]  }
  0x24   :  { %560 = vmatpush1.bf16.msra.mxu1 %v1105_v22  ;;  %v51_v47 = vld [vmem:[%s1482_s0 + $0x38] sm:$0xff]  ;;  %v1127_v50 = vld [vmem:[#allocation3 + $0xa4] ss:$8 sps:$4 sm:$0xff]   ;;  %v1129_v51 = vld [vmem:[#allocation3 + $0xa0] ss:$8 sps:$4 sm:$0xff]  }
  0x25   :  { %197 = vmatpush1.bf16.msra.mxu0 %v1088_v9  ;;  %561 = vmatprep.subr.bf16.mxu1 %v1106_v24  ;;  %v1126_v48 = vld [vmem:[#allocation3 + $0x90] ss:$8 sps:$4 sm:$0xff]   ;;  %v63_v49 = vpack.c.bf16 %v51_v47, %v50_v46  ;;  %v1130_v52 = vld [vmem:[#allocation3 + $0xb4] ss:$8 sps:$4 sm:$0xff]   ;;  %v53_v54 = vld [vmem:[%s1482_s0 + $0x48] sm:$0xff] }
  0x26   :  { %198 = vmatprep.subr.bf16.mxu0 %v1089_v10  ;;  %v52_v53 = vld [vmem:[%s1482_s0 + $0x40] sm:$0xff]  ;;  %v1132_v55 = vld [vmem:[#allocation3 + $0xb0] ss:$8 sps:$4 sm:$0xff]   ;;  %v57_v0 = vld [vmem:[%s1482_s0 + $0x68] sm:$0xff] }
  0x27   :  { %v64_v56 = vpack.c.bf16 %v53_v54, %v52_v53  ;;  %v1133_v57 = vld [vmem:[#allocation3 + $0xc4] ss:$8 sps:$4 sm:$0xff]   ;;  %v1135_v58 = vld [vmem:[#allocation3 + $0xc0] ss:$8 sps:$4 sm:$0xff]   ;;  %v1136_v59 = vld [vmem:[#allocation3 + $0xd4] ss:$8 sps:$4 sm:$0xff]  }
  0x28   :  { %562 = vmatpush1.bf16.msra.mxu1 %v1108_v27  ;;  %v54_v60 = vld [vmem:[%s1482_s0 + $0x50] sm:$0xff]  ;;  %v55_v61 = vld [vmem:[%s1482_s0 + $0x58] sm:$0xff]  ;;  %v56_v63 = vld [vmem:[%s1482_s0 + $0x60] sm:$0xff] }
  0x29   :  { %199 = vmatpush1.bf16.msra.mxu0 %v1091_v11  ;;  %563 = vmatprep.subr.bf16.mxu1 %v1109_v29  ;;  %v65_v62 = vpack.c.bf16 %v55_v61, %v54_v60  ;;  %v66_v2 = vpack.c.bf16 %v57_v0, %v56_v63  ;;  %v58_v3 = vld [vmem:[%s1482_s0 + $0x70] sm:$0xff]  ;;  %v59_v4 = vld [vmem:[%s1482_s0 + $0x78] sm:$0xff]  ;;  %v1141_v8 = vld [vmem:[#allocation3 + $0xe0] ss:$8 sps:$4 sm:$0xff]   ;;  %v83_v11 = vlaneseq }
  0x2a   :  { %200 = vmatprep.subr.bf16.mxu0 %v1092_v15  ;;  %v67_v5 = vpack.c.bf16 %v59_v4, %v58_v3  ;;  %v1138_v6 = vld [vmem:[#allocation3 + $0xd0] ss:$8 sps:$4 sm:$0xff]   ;;  %v1139_v7 = vld [vmem:[#allocation3 + $0xe4] ss:$8 sps:$4 sm:$0xff]   ;;  %v1142_v9 = vld [vmem:[#allocation3 + $0xf4] ss:$8 sps:$4 sm:$0xff]  }
  0x2b   :  { %v1144_v10 = vld [vmem:[#allocation3 + $0xf0] ss:$8 sps:$4 sm:$0xff]   ;;  %v1362_v12 = vshrl.u32 %v83_v11, 7  ;;  %v81_v14 = vld [vmem:[%s1484_s2] sm:$0x3] }
  0x2c   :  { %564 = vmatpush1.bf16.msra.mxu1 %v1111_v30 }
  0x2d   :  { %201 = vmatpush1.bf16.msra.mxu0 %v1094_v19  ;;  %565 = vmatprep.subr.bf16.mxu1 %v1112_v32  ;;  %v1365_v13 = vsub.s32 0, %v1362_v12  ;;  %v89_v15 = vsub.s32 1, %v1362_v12 }
  0x2e   :  { %892 = vmatprep.subr.msk.bf16.mxu0 %vm183_vm0, %v891_v20 }
  0x2f   :  { %v1372_v16 = vrot.slane %v81_v14, %v1365_v13  ;;  %v1376_v17 = vrot.slane %v81_v14, %v89_v15 }
  0x30   :  { %566 = vmatpush1.bf16.msra.mxu1 %v1114_v34 }
  0x31   :  { %203 = vmatpush1.bf16.msra.mxu0 %v185_v26  ;;  %567 = vmatprep.subr.bf16.mxu1 %v1115_v36 }
  0x34   :  { %893 = vmatmul.mubr.msk.bf16.vlgmr.msra.gmra.mrb[0].mxu0 %vm158_vm1, %v60_v28  ;;  %568 = vmatpush1.bf16.msra.mxu1 %v1117_v37 }
  0x35   :  { %232 = vmatprep.mubr.bf16.mxu0 %v1200_v1  ;;  %569 = vmatprep.subr.bf16.mxu1 %v1118_v38 }
  0x38   :  { %570 = vmatpush1.bf16.msra.mxu1 %v1120_v41 }
  0x39   :  { %571 = vmatprep.subr.bf16.mxu1 %v1121_v43 }
  0x3c   :  { %894 = vmatmul.mubr.msk.bf16.gmra.mrb[4].mxu0 %vm158_vm1, %v61_v35  ;;  %572 = vmatpush1.bf16.msra.mxu1 %v1123_v44 }
  0x3d   :  { %242 = vmatprep.mubr.bf16.mxu0 %v1200_v1  ;;  %573 = vmatprep.subr.bf16.mxu1 %v1124_v45 }
  0x40   :  { %574 = vmatpush1.bf16.msra.mxu1 %v1126_v48 }
  0x41   :  { %575 = vmatprep.subr.bf16.mxu1 %v1127_v50 }
  0x44   :  { %895 = vmatmul.mubr.msk.bf16.gmra.mrb[8].mxu0 %vm158_vm1, %v62_v42  ;;  %576 = vmatpush1.bf16.msra.mxu1 %v1129_v51 }
  0x45   :  { %252 = vmatprep.mubr.bf16.mxu0 %v1200_v1  ;;  %577 = vmatprep.subr.bf16.mxu1 %v1130_v52 }
  0x48   :  { %578 = vmatpush1.bf16.msra.mxu1 %v1132_v55 }
  0x49   :  { %579 = vmatprep.subr.bf16.mxu1 %v1133_v57 }
  0x4c   :  { %896 = vmatmul.mubr.msk.bf16.gmra.mrb[12].mxu0 %vm158_vm1, %v63_v49  ;;  %580 = vmatpush1.bf16.msra.mxu1 %v1135_v58 }
  0x4d   :  { %262 = vmatprep.mubr.bf16.mxu0 %v1200_v1  ;;  %581 = vmatprep.subr.bf16.mxu1 %v1136_v59 }
  0x50   :  { %582 = vmatpush1.bf16.msra.mxu1 %v1138_v6 }
  0x51   :  { %583 = vmatprep.subr.bf16.mxu1 %v1139_v7 }
  0x54   :  { %897 = vmatmul.mubr.msk.bf16.gmra.mrb[16].mxu0 %vm158_vm1, %v64_v56  ;;  %584 = vmatpush1.bf16.msra.mxu1 %v1141_v8 }
  0x55   :  { %272 = vmatprep.mubr.bf16.mxu0 %v1200_v1  ;;  %585 = vmatprep.subr.bf16.mxu1 %v1142_v9 }
  0x58   :  { %586 = vmatpush1.bf16.msra.mxu1 %v1144_v10 }
  0x5c   :  { %898 = vmatmul.mubr.msk.bf16.gmra.mrb[20].mxu0 %vm158_vm1, %v65_v62 }
  0x5d   :  { %282 = vmatprep.mubr.bf16.mxu0 %v1200_v1 }
  0x64   :  { %899 = vmatmul.mubr.msk.bf16.gmra.mrb[24].mxu0 %vm158_vm1, %v66_v2 }
  0x65   :  { %292 = vmatprep.mubr.bf16.mxu0 %v1200_v1 }
  0x6c   :  { %900 = vmatmul.mubr.msk.bf16.gmra.mrb[28].mxu0 %vm158_vm1, %v67_v5 }
 0x107   :  { %v224_v18 = vpop.f32.mrb[0].mxu0 }
 0x108   :  { %v225_v19 = vadd.f32 %v224_v18, %v1372_v16  ;;  %v226_v20 = vpop.f32.mrb[1].mxu0 }
 0x109   :  { %v227_v21 = vadd.f32 %v226_v20, %v1376_v17  ;;  %v228_v22 = vpop.f32.mrb[2].mxu0 }
 0x10a   :  { %v229_v23 = vadd.f32 %v228_v22, %v1372_v16  ;;  %v230_v24 = vpop.f32.mrb[3].mxu0  ;;  %v303_v26 = vmax.f32 %v225_v19, 0.0 }
 0x10b   :  { %v231_v25 = vadd.f32 %v230_v24, %v1376_v17  ;;  %v304_v28 = vmax.f32 %v227_v21, 0.0 }
 0x10c   :  { %v305_v27 = vmax.f32 %v229_v23, 0.0 }
 0x10d   :  { %v306_v29 = vmax.f32 %v231_v25, 0.0 }
 0x10e   :  { %v335_v30 = vpack.c.bf16 %v305_v27, %v303_v26 }
 0x10f   :  { %v234_v31 = vpop.f32.mrb[4].mxu0  ;;  %v336_v32 = vpack.c.bf16 %v306_v29, %v304_v28 }
 0x110   :  { %v235_v33 = vadd.f32 %v234_v31, %v1372_v16  ;;  %v236_v34 = vpop.f32.mrb[5].mxu0 }
 0x111   :  { %v237_v35 = vadd.f32 %v236_v34, %v1376_v17  ;;  %v238_v36 = vpop.f32.mrb[6].mxu0  ;;  %587 = vmatprep.mubr.bf16.mxu1 %v336_v32 }
 0x112   :  { %v239_v37 = vadd.f32 %v238_v36, %v1372_v16  ;;  %v240_v38 = vpop.f32.mrb[7].mxu0  ;;  %588 = vmatmul.mubr.bf16.vlgmr.msra.gmra.mrb[0].mxu1 %v335_v30  ;;  %v307_v40 = vmax.f32 %v235_v33, 0.0 }
 0x113   :  { %v241_v39 = vadd.f32 %v240_v38, %v1376_v17  ;;  %v308_v42 = vmax.f32 %v237_v35, 0.0 }
 0x114   :  { %v309_v41 = vmax.f32 %v239_v37, 0.0 }
 0x115   :  { %v310_v43 = vmax.f32 %v241_v39, 0.0 }
 0x116   :  { %v337_v44 = vpack.c.bf16 %v309_v41, %v307_v40 }
 0x117   :  { %v338_v45 = vpack.c.bf16 %v310_v43, %v308_v42  ;;  %v244_v46 = vpop.f32.mrb[8].mxu0 }
 0x118   :  { %v245_v47 = vadd.f32 %v244_v46, %v1372_v16  ;;  %v246_v48 = vpop.f32.mrb[9].mxu0 }
 0x119   :  { %v247_v49 = vadd.f32 %v246_v48, %v1376_v17  ;;  %v248_v50 = vpop.f32.mrb[10].mxu0  ;;  %597 = vmatprep.mubr.bf16.mxu1 %v338_v45 }
 0x11a   :  { %v249_v51 = vadd.f32 %v248_v50, %v1372_v16  ;;  %v250_v52 = vpop.f32.mrb[11].mxu0  ;;  %598 = vmatmul.mubr.bf16.gmra.mrb[4].mxu1 %v337_v44  ;;  %v311_v54 = vmax.f32 %v245_v47, 0.0 }
 0x11b   :  { %v251_v53 = vadd.f32 %v250_v52, %v1376_v17  ;;  %v312_v56 = vmax.f32 %v247_v49, 0.0 }
 0x11c   :  { %v313_v55 = vmax.f32 %v249_v51, 0.0 }
 0x11d   :  { %v314_v57 = vmax.f32 %v251_v53, 0.0 }
 0x11e   :  { %v339_v58 = vpack.c.bf16 %v313_v55, %v311_v54 }
 0x11f   :  { %v340_v59 = vpack.c.bf16 %v314_v57, %v312_v56  ;;  %v254_v60 = vpop.f32.mrb[12].mxu0 }
 0x120   :  { %v255_v61 = vadd.f32 %v254_v60, %v1372_v16  ;;  %v256_v62 = vpop.f32.mrb[13].mxu0 }
 0x121   :  { %v257_v63 = vadd.f32 %v256_v62, %v1376_v17  ;;  %v258_v0 = vpop.f32.mrb[14].mxu0  ;;  %607 = vmatprep.mubr.bf16.mxu1 %v340_v59 }
 0x122   :  { %v259_v2 = vadd.f32 %v258_v0, %v1372_v16  ;;  %v260_v3 = vpop.f32.mrb[15].mxu0  ;;  %608 = vmatmul.mubr.bf16.gmra.mrb[8].mxu1 %v339_v58  ;;  %v315_v5 = vmax.f32 %v255_v61, 0.0 }
 0x123   :  { %v261_v4 = vadd.f32 %v260_v3, %v1376_v17  ;;  %v316_v7 = vmax.f32 %v257_v63, 0.0 }
 0x124   :  { %v317_v6 = vmax.f32 %v259_v2, 0.0 }
 0x125   :  { %v318_v8 = vmax.f32 %v261_v4, 0.0 }
 0x126   :  { %v341_v9 = vpack.c.bf16 %v317_v6, %v315_v5 }
 0x127   :  { %v342_v10 = vpack.c.bf16 %v318_v8, %v316_v7  ;;  %v264_v11 = vpop.f32.mrb[16].mxu0 }
 0x128   :  { %v265_v14 = vadd.f32 %v264_v11, %v1372_v16  ;;  %v266_v18 = vpop.f32.mrb[17].mxu0 }
 0x129   :  { %v267_v19 = vadd.f32 %v266_v18, %v1376_v17  ;;  %v268_v20 = vpop.f32.mrb[18].mxu0  ;;  %617 = vmatprep.mubr.bf16.mxu1 %v342_v10 }
 0x12a   :  { %v269_v21 = vadd.f32 %v268_v20, %v1372_v16  ;;  %v270_v22 = vpop.f32.mrb[19].mxu0  ;;  %618 = vmatmul.mubr.bf16.gmra.mrb[12].mxu1 %v341_v9  ;;  %v319_v24 = vmax.f32 %v265_v14, 0.0  ;;  %v383_v9 = vld [vmem:[%s1486_s4] sm:$0x3] }
 0x12b   :  { %v271_v23 = vadd.f32 %v270_v22, %v1376_v17  ;;  %v320_v26 = vmax.f32 %v267_v19, 0.0  ;;  %v1414_v10 = vrot.slane %v383_v9, %v1365_v13 }
 0x12c   :  { %v321_v25 = vmax.f32 %v269_v21, 0.0 }
 0x12d   :  { %v322_v27 = vmax.f32 %v271_v23, 0.0 }
 0x12e   :  { %v343_v28 = vpack.c.bf16 %v321_v25, %v319_v24 }
 0x12f   :  { %v344_v29 = vpack.c.bf16 %v322_v27, %v320_v26  ;;  %v274_v30 = vpop.f32.mrb[20].mxu0 }
 0x130   :  { %v275_v31 = vadd.f32 %v274_v30, %v1372_v16  ;;  %v276_v32 = vpop.f32.mrb[21].mxu0 }
 0x131   :  { %v277_v33 = vadd.f32 %v276_v32, %v1376_v17  ;;  %v278_v34 = vpop.f32.mrb[22].mxu0  ;;  %627 = vmatprep.mubr.bf16.mxu1 %v344_v29 }
 0x132   :  { %v279_v35 = vadd.f32 %v278_v34, %v1372_v16  ;;  %v280_v36 = vpop.f32.mrb[23].mxu0  ;;  %628 = vmatmul.mubr.bf16.gmra.mrb[16].mxu1 %v343_v28  ;;  %v323_v38 = vmax.f32 %v275_v31, 0.0 }
 0x133   :  { %v281_v37 = vadd.f32 %v280_v36, %v1376_v17  ;;  %v324_v40 = vmax.f32 %v277_v33, 0.0 }
 0x134   :  { %v325_v39 = vmax.f32 %v279_v35, 0.0 }
 0x135   :  { %v326_v41 = vmax.f32 %v281_v37, 0.0 }
 0x136   :  { %v345_v42 = vpack.c.bf16 %v325_v39, %v323_v38 }
 0x137   :  { %v346_v43 = vpack.c.bf16 %v326_v41, %v324_v40  ;;  %v284_v44 = vpop.f32.mrb[24].mxu0 }
 0x138   :  { %v285_v45 = vadd.f32 %v284_v44, %v1372_v16  ;;  %v286_v46 = vpop.f32.mrb[25].mxu0 }
 0x139   :  { %v287_v47 = vadd.f32 %v286_v46, %v1376_v17  ;;  %v288_v48 = vpop.f32.mrb[26].mxu0  ;;  %637 = vmatprep.mubr.bf16.mxu1 %v346_v43 }
 0x13a   :  { %v289_v49 = vadd.f32 %v288_v48, %v1372_v16  ;;  %v290_v50 = vpop.f32.mrb[27].mxu0  ;;  %638 = vmatmul.mubr.bf16.gmra.mrb[20].mxu1 %v345_v42  ;;  %v327_v52 = vmax.f32 %v285_v45, 0.0 }
 0x13b   :  { %v291_v51 = vadd.f32 %v290_v50, %v1376_v17  ;;  %v328_v54 = vmax.f32 %v287_v47, 0.0 }
 0x13c   :  { %v329_v53 = vmax.f32 %v289_v49, 0.0 }
 0x13d   :  { %v330_v55 = vmax.f32 %v291_v51, 0.0 }
 0x13e   :  { %v347_v56 = vpack.c.bf16 %v329_v53, %v327_v52 }
 0x13f   :  { %v348_v57 = vpack.c.bf16 %v330_v55, %v328_v54  ;;  %v294_v58 = vpop.f32.mrb[28].mxu0 }
 0x140   :  { %v295_v59 = vadd.f32 %v294_v58, %v1372_v16  ;;  %v296_v60 = vpop.f32.mrb[29].mxu0 }
 0x141   :  { %v297_v61 = vadd.f32 %v296_v60, %v1376_v17  ;;  %v298_v62 = vpop.f32.mrb[30].mxu0  ;;  %647 = vmatprep.mubr.bf16.mxu1 %v348_v57 }
 0x142   :  { %v299_v63 = vadd.f32 %v298_v62, %v1372_v16  ;;  %v300_v0 = vpop.f32.mrb[31].mxu0  ;;  %648 = vmatmul.mubr.bf16.gmra.mrb[24].mxu1 %v347_v56  ;;  %v331_v3 = vmax.f32 %v295_v59, 0.0  ;;  %v1418_v16 = vrot.slane %v383_v9, %v89_v15 }
 0x143   :  { %v301_v2 = vadd.f32 %v300_v0, %v1376_v17  ;;  %v332_v5 = vmax.f32 %v297_v61, 0.0 }
 0x144   :  { %v333_v4 = vmax.f32 %v299_v63, 0.0 }
 0x145   :  { %v334_v6 = vmax.f32 %v301_v2, 0.0 }
 0x146   :  { %v349_v7 = vpack.c.bf16 %v333_v4, %v331_v3 }
 0x147   :  { %v350_v8 = vpack.c.bf16 %v334_v6, %v332_v5 }
 0x149   :  { %657 = vmatprep.mubr.bf16.mxu1 %v350_v8 }
 0x14a   :  { %658 = vmatmul.mubr.bf16.gmra.mrb[28].mxu1 %v349_v7 }
 0x1e5   :  { %v589_v17 = vpop.f32.mrb[0].mxu1 }
 0x1e6   :  { %v590_v11 = vadd.f32 %v589_v17, %v1414_v10  ;;  %v591_v14 = vpop.f32.mrb[1].mxu1 }
 0x1e7   :  { %v592_v18 = vadd.f32 %v591_v14, %v1418_v16  ;;  %v593_v19 = vpop.f32.mrb[2].mxu1 }
 0x1e8   :  { %v668_v20 = vmax.f32 %v590_v11, 0.0  ;;  %v594_v21 = vadd.f32 %v593_v19, %v1414_v10  ;;  %v595_v22 = vpop.f32.mrb[3].mxu1 }
 0x1e9   :  { %v669_v23 = vmax.f32 %v592_v18, 0.0  ;;  %v596_v24 = vadd.f32 %v595_v22, %v1418_v16 }
 0x1ea   :  { %v670_v25 = vmax.f32 %v594_v21, 0.0 }
 0x1eb   :  { %v671_v26 = vmax.f32 %v596_v24, 0.0  ;;  %v963_v27 = vpack.i.bf16 %v668_v20, %v669_v23 }
 0x1ed   :  { %v599_v28 = vpop.f32.mrb[4].mxu1  ;;  %964 = vxpose.xlu0.b32.start [1/16] %v963_v27, 128  ;;  %v965_v15 = vpack.i.bf16 %v670_v25, %v671_v26 }
 0x1ee   :  { %v600_v29 = vadd.f32 %v599_v28, %v1414_v10  ;;  %v601_v30 = vpop.f32.mrb[5].mxu1 }
 0x1ef   :  { %v602_v31 = vadd.f32 %v601_v30, %v1418_v16  ;;  %v603_v32 = vpop.f32.mrb[6].mxu1 }
 0x1f0   :  { %v672_v33 = vmax.f32 %v600_v29, 0.0  ;;  %v604_v34 = vadd.f32 %v603_v32, %v1414_v10  ;;  %v605_v35 = vpop.f32.mrb[7].mxu1 }
 0x1f1   :  { %v673_v36 = vmax.f32 %v602_v31, 0.0  ;;  %v606_v37 = vadd.f32 %v605_v35, %v1418_v16  ;;  %966 = vxpose.xlu0.b32.cont [2/16] %v965_v15, 128 }
 0x1f2   :  { %v674_v38 = vmax.f32 %v604_v34, 0.0 }
 0x1f3   :  { %v675_v39 = vmax.f32 %v606_v37, 0.0  ;;  %v967_v40 = vpack.i.bf16 %v672_v33, %v673_v36 }
 0x1f5   :  { %v609_v41 = vpop.f32.mrb[8].mxu1  ;;  %968 = vxpose.xlu0.b32.cont [3/16] %v967_v40, 128  ;;  %v969_v42 = vpack.i.bf16 %v674_v38, %v675_v39 }
 0x1f6   :  { %v610_v43 = vadd.f32 %v609_v41, %v1414_v10  ;;  %v611_v44 = vpop.f32.mrb[9].mxu1 }
 0x1f7   :  { %v612_v45 = vadd.f32 %v611_v44, %v1418_v16  ;;  %v613_v46 = vpop.f32.mrb[10].mxu1 }
 0x1f8   :  { %v676_v47 = vmax.f32 %v610_v43, 0.0  ;;  %v614_v48 = vadd.f32 %v613_v46, %v1414_v10  ;;  %v615_v49 = vpop.f32.mrb[11].mxu1 }
 0x1f9   :  { %v677_v50 = vmax.f32 %v612_v45, 0.0  ;;  %v616_v51 = vadd.f32 %v615_v49, %v1418_v16  ;;  %970 = vxpose.xlu0.b32.cont [4/16] %v969_v42, 128 }
 0x1fa   :  { %v678_v52 = vmax.f32 %v614_v48, 0.0 }
 0x1fb   :  { %v679_v53 = vmax.f32 %v616_v51, 0.0  ;;  %v971_v54 = vpack.i.bf16 %v676_v47, %v677_v50 }
 0x1fd   :  { %v619_v55 = vpop.f32.mrb[12].mxu1  ;;  %972 = vxpose.xlu0.b32.cont [5/16] %v971_v54, 128  ;;  %v973_v56 = vpack.i.bf16 %v678_v52, %v679_v53 }
 0x1fe   :  { %v620_v57 = vadd.f32 %v619_v55, %v1414_v10  ;;  %v621_v58 = vpop.f32.mrb[13].mxu1 }
 0x1ff   :  { %v622_v59 = vadd.f32 %v621_v58, %v1418_v16  ;;  %v623_v60 = vpop.f32.mrb[14].mxu1 }
 0x200   :  { %v680_v61 = vmax.f32 %v620_v57, 0.0  ;;  %v624_v62 = vadd.f32 %v623_v60, %v1414_v10  ;;  %v625_v63 = vpop.f32.mrb[15].mxu1 }
 0x201   :  { %v681_v0 = vmax.f32 %v622_v59, 0.0  ;;  %v626_v2 = vadd.f32 %v625_v63, %v1418_v16  ;;  %974 = vxpose.xlu0.b32.cont [6/16] %v973_v56, 128 }
 0x202   :  { %v682_v3 = vmax.f32 %v624_v62, 0.0 }
 0x203   :  { %v683_v4 = vmax.f32 %v626_v2, 0.0  ;;  %v975_v5 = vpack.i.bf16 %v680_v61, %v681_v0 }
 0x205   :  { %v629_v6 = vpop.f32.mrb[16].mxu1  ;;  %976 = vxpose.xlu0.b32.cont [7/16] %v975_v5, 128  ;;  %v977_v7 = vpack.i.bf16 %v682_v3, %v683_v4  ;;  %v1201_v4 = vmov 1966171168  }
 0x206   :  { %v630_v8 = vadd.f32 %v629_v6, %v1414_v10  ;;  %v631_v9 = vpop.f32.mrb[17].mxu1  ;;  %v801_v5 = vunpack.c.l.s4 %v1201_v4 }
 0x207   :  { %v632_v17 = vadd.f32 %v631_v9, %v1418_v16  ;;  %v633_v11 = vpop.f32.mrb[18].mxu1 }
 0x208   :  { %v684_v14 = vmax.f32 %v630_v8, 0.0  ;;  %v634_v18 = vadd.f32 %v633_v11, %v1414_v10  ;;  %v635_v19 = vpop.f32.mrb[19].mxu1  ;;  %v802_v6 = vunpack.c.0.s8 %v801_v5 }
 0x209   :  { %v685_v20 = vmax.f32 %v632_v17, 0.0  ;;  %v636_v21 = vadd.f32 %v635_v19, %v1418_v16  ;;  %978 = vxpose.xlu0.b32.cont [8/16] %v977_v7, 128  ;;  %v1455_v7 = vld.sshfl [vmem:[%s1487_s5] sm:$0x11 pattern:$0x75316420]  ;;  %s1202_s5 = smov [#allocation6]  }
 0x20a   :  { %v686_v22 = vmax.f32 %v634_v18, 0.0  ;;  %v781_v17 = vld [vmem:[#allocation2] sm:$0x1]  ;;  %s869_s24 = sshll.u32 %s1202_s5, 4  ;;  %s870_s24 = int_to_ptr.vmem [resolvable:$true] %s869_s24 }
 0x20b   :  { %v687_v23 = vmax.f32 %v636_v21, 0.0  ;;  %v979_v24 = vpack.i.bf16 %v684_v14, %v685_v20  ;;  %784 = vperm.xlu1 %1075, %v781_v17   ;;  %s1171_s25 = scalar_lea.vmem %s870_s24, 16  ;;  %s1175_s26 = scalar_lea.vmem %s870_s24, 32 }
 0x20c   :  { %p1172_p8 = scmp.ne.s32.totalorder %s870_s24, %s1171_s25  ;;  %p1176_p9 = scmp.lt.s32.totalorder %s870_s24, %s870_s24 }
 0x20d   :  { %v639_v25 = vpop.f32.mrb[20].mxu1  ;;  %980 = vxpose.xlu0.b32.cont [9/16] %v979_v24, 128  ;;  %v981_v26 = vpack.i.bf16 %v686_v22, %v687_v23  ;;  %p1177_p10 = scmp.lt.s32.totalorder %s1175_s26, %s1171_s25 }
 0x20e   :  { %v640_v27 = vadd.f32 %v639_v25, %v1414_v10  ;;  %v641_v28 = vpop.f32.mrb[21].mxu1 }
 0x20f   :  { %v642_v15 = vadd.f32 %v641_v28, %v1418_v16  ;;  %v643_v29 = vpop.f32.mrb[22].mxu1  ;;  %p1178_p11 = por %p1177_p10, %p1176_p9 }
 0x210   :  { %v688_v30 = vmax.f32 %v640_v27, 0.0  ;;  %v644_v31 = vadd.f32 %v643_v29, %v1414_v10  ;;  %v645_v32 = vpop.f32.mrb[23].mxu1 }
 0x211   :  { %v689_v33 = vmax.f32 %v642_v15, 0.0  ;;  %v646_v34 = vadd.f32 %v645_v32, %v1418_v16  ;;  %982 = vxpose.xlu0.b32.cont [10/16] %v981_v26, 128  ;;  %p1179_p12 = pnand %p1178_p11, %p1172_p8 }
 0x212   :  { %v690_v35 = vmax.f32 %v644_v31, 0.0 }
 0x213   :  { %v691_v36 = vmax.f32 %v646_v34, 0.0  ;;  %v983_v37 = vpack.i.bf16 %v688_v30, %v689_v33 }
 0x215   :  { %v649_v38 = vpop.f32.mrb[24].mxu1  ;;  %984 = vxpose.xlu0.b32.cont [11/16] %v983_v37, 128  ;;  %v985_v39 = vpack.i.bf16 %v690_v35, %v691_v36 }
 0x216   :  { %v650_v40 = vadd.f32 %v649_v38, %v1414_v10  ;;  %v651_v41 = vpop.f32.mrb[25].mxu1 }
 0x217   :  { %v652_v42 = vadd.f32 %v651_v41, %v1418_v16  ;;  %v653_v43 = vpop.f32.mrb[26].mxu1 }
 0x218   :  { %v692_v44 = vmax.f32 %v650_v40, 0.0  ;;  %v654_v45 = vadd.f32 %v653_v43, %v1414_v10  ;;  %v655_v46 = vpop.f32.mrb[27].mxu1 }
 0x219   :  { %v693_v47 = vmax.f32 %v652_v42, 0.0  ;;  %v656_v48 = vadd.f32 %v655_v46, %v1418_v16  ;;  %986 = vxpose.xlu0.b32.cont [12/16] %v985_v39, 128 }
 0x21a   :  { %v694_v49 = vmax.f32 %v654_v45, 0.0 }
 0x21b   :  { %v695_v50 = vmax.f32 %v656_v48, 0.0  ;;  %v987_v51 = vpack.i.bf16 %v692_v44, %v693_v47 }
 0x21d   :  { %v659_v52 = vpop.f32.mrb[28].mxu1  ;;  %988 = vxpose.xlu0.b32.cont [13/16] %v987_v51, 128  ;;  %v989_v53 = vpack.i.bf16 %v694_v49, %v695_v50 }
 0x21e   :  { %v660_v54 = vadd.f32 %v659_v52, %v1414_v10  ;;  %v661_v55 = vpop.f32.mrb[29].mxu1 }
 0x21f   :  { %v662_v56 = vadd.f32 %v661_v55, %v1418_v16  ;;  %v663_v57 = vpop.f32.mrb[30].mxu1 }
 0x220   :  { %v696_v58 = vmax.f32 %v660_v54, 0.0  ;;  %v664_v59 = vadd.f32 %v663_v57, %v1414_v10  ;;  %v665_v60 = vpop.f32.mrb[31].mxu1  ;;  %v799_v10 = vcombine.high %v1455_v7, %v1455_v7 }
 0x221   :  { %v697_v61 = vmax.f32 %v662_v56, 0.0  ;;  %v666_v62 = vadd.f32 %v665_v60, %v1418_v16  ;;  %990 = vxpose.xlu0.b32.cont [14/16] %v989_v53, 128  ;;  %v1460_v16 = vsub.s32 %v802_v6, %v1362_v12 }
 0x222   :  { %v698_v63 = vmax.f32 %v664_v59, 0.0 }
 0x223   :  { %v699_v0 = vmax.f32 %v666_v62, 0.0  ;;  %v991_v2 = vpack.i.bf16 %v696_v58, %v697_v61  ;;  %v806_v8 = vrot.slane %v1455_v7, %v1460_v16  ;;  %v813_v9 = vrot.slane %v799_v10, %v1460_v16 }
 0x225   :  { %992 = vxpose.xlu0.b32.cont [15/16] %v991_v2, 128  ;;  %v993_v3 = vpack.i.bf16 %v698_v63, %v699_v0  ;;  %848 = vmatprep.mubr.bf16.mxu0 %v813_v9 }
 0x229   :  { %994 = vxpose.xlu0.b32.end [16/16] %v993_v3, 128 }
 0x252   :  { %1076 = vset.pattern.permute.xlu0 %v1200_v1 }
 0x26d   :  { %v995_v11 = vpop.trf.xlu0 }
 0x26e   :  { %v999_v14 = vunpack.i.h.bf16 %v995_v11  ;;  %v996_v18 = vunpack.i.l.bf16 %v995_v11 }
 0x271   :  { %v1000_v19 = vpop.trf.xlu0 }
 0x272   :  { %v1004_v20 = vunpack.i.h.bf16 %v1000_v19  ;;  %v1001_v21 = vunpack.i.l.bf16 %v1000_v19 }
 0x274   :  { %v772_v22 = vpack.c.bf16 %v1001_v21, %v996_v18  ;;  %v764_v23 = vpack.c.bf16 %v1004_v20, %v999_v14 }
 0x275   :  { %v1005_v12 = vpop.trf.xlu0 }
 0x276   :  { %935 = vmatprep.subr.bf16.mxu0 %v772_v22  ;;  %v1009_v24 = vunpack.i.h.bf16 %v1005_v12  ;;  %v1006_v25 = vunpack.i.l.bf16 %v1005_v12 }
 0x277   :  { %936 = vmatpush3.bf16.msra.mxu0 %v764_v23 }
 0x279   :  { %v1010_v26 = vpop.trf.xlu0 }
 0x27a   :  { %v1014_v27 = vunpack.i.h.bf16 %v1010_v26  ;;  %v1011_v28 = vunpack.i.l.bf16 %v1010_v26 }
 0x27c   :  { %v773_v15 = vpack.c.bf16 %v1011_v28, %v1006_v25  ;;  %v765_v29 = vpack.c.bf16 %v1014_v27, %v1009_v24 }
 0x27d   :  { %v1015_v30 = vpop.trf.xlu0 }
 0x27e   :  { %937 = vmatprep.subr.bf16.mxu0 %v773_v15  ;;  %v1019_v1 = vunpack.i.h.bf16 %v1015_v30  ;;  %v1016_v31 = vunpack.i.l.bf16 %v1015_v30 }
 0x27f   :  { %938 = vmatpush3.bf16.msra.mxu0 %v765_v29 }
 0x281   :  { %v1020_v32 = vpop.trf.xlu0 }
 0x282   :  { %v1024_v33 = vunpack.i.h.bf16 %v1020_v32  ;;  %v1021_v34 = vunpack.i.l.bf16 %v1020_v32 }
 0x284   :  { %v774_v35 = vpack.c.bf16 %v1021_v34, %v1016_v31  ;;  %v766_v36 = vpack.c.bf16 %v1024_v33, %v1019_v1 }
 0x285   :  { %v1025_v37 = vpop.trf.xlu0 }
 0x286   :  { %939 = vmatprep.subr.bf16.mxu0 %v774_v35  ;;  %v1029_v38 = vunpack.i.h.bf16 %v1025_v37  ;;  %v1026_v39 = vunpack.i.l.bf16 %v1025_v37 }
 0x287   :  { %940 = vmatpush3.bf16.msra.mxu0 %v766_v36 }
 0x289   :  { %v1030_v40 = vpop.trf.xlu0 }
 0x28a   :  { %v1034_v41 = vunpack.i.h.bf16 %v1030_v40  ;;  %v1031_v42 = vunpack.i.l.bf16 %v1030_v40  ;;  %v785_v20 = vpop.permute.xlu1 %784 }
 0x28b   :  { %v790_v22 = vrot.slane %v785_v20, %v1365_v13 }
 0x28c   :  { %v775_v43 = vpack.c.bf16 %v1031_v42, %v1026_v39  ;;  %v767_v44 = vpack.c.bf16 %v1034_v41, %v1029_v38 }
 0x28d   :  { %v1035_v45 = vpop.trf.xlu0 }
 0x28e   :  { %941 = vmatprep.subr.bf16.mxu0 %v775_v43  ;;  %v1039_v46 = vunpack.i.h.bf16 %v1035_v45  ;;  %v1036_v47 = vunpack.i.l.bf16 %v1035_v45 }
 0x28f   :  { %942 = vmatpush3.bf16.msra.mxu0 %v767_v44 }
 0x291   :  { %v1040_v48 = vpop.trf.xlu0 }
 0x292   :  { %v1044_v49 = vunpack.i.h.bf16 %v1040_v48  ;;  %v1041_v50 = vunpack.i.l.bf16 %v1040_v48 }
 0x294   :  { %v776_v51 = vpack.c.bf16 %v1041_v50, %v1036_v47  ;;  %v768_v52 = vpack.c.bf16 %v1044_v49, %v1039_v46 }
 0x295   :  { %v1045_v53 = vpop.trf.xlu0 }
 0x296   :  { %943 = vmatprep.subr.bf16.mxu0 %v776_v51  ;;  %v1049_v54 = vunpack.i.h.bf16 %v1045_v53  ;;  %v1046_v55 = vunpack.i.l.bf16 %v1045_v53 }
 0x297   :  { %944 = vmatpush3.bf16.msra.mxu0 %v768_v52 }
 0x299   :  { %v1050_v56 = vpop.trf.xlu0 }
 0x29a   :  { %v1054_v57 = vunpack.i.h.bf16 %v1050_v56  ;;  %v1051_v58 = vunpack.i.l.bf16 %v1050_v56 }
 0x29c   :  { %v777_v59 = vpack.c.bf16 %v1051_v58, %v1046_v55  ;;  %v769_v60 = vpack.c.bf16 %v1054_v57, %v1049_v54 }
 0x29d   :  { %v1055_v61 = vpop.trf.xlu0 }
 0x29e   :  { %945 = vmatprep.subr.bf16.mxu0 %v777_v59  ;;  %v1059_v62 = vunpack.i.h.bf16 %v1055_v61  ;;  %v1056_v63 = vunpack.i.l.bf16 %v1055_v61 }
 0x29f   :  { %946 = vmatpush3.bf16.msra.mxu0 %v769_v60 }
 0x2a1   :  { %v1060_v0 = vpop.trf.xlu0 }
 0x2a2   :  { %v1064_v2 = vunpack.i.h.bf16 %v1060_v0  ;;  %v1061_v3 = vunpack.i.l.bf16 %v1060_v0 }
 0x2a4   :  { %v778_v4 = vpack.c.bf16 %v1061_v3, %v1056_v63  ;;  %v770_v5 = vpack.c.bf16 %v1064_v2, %v1059_v62 }
 0x2a5   :  { %v1065_v6 = vpop.trf.xlu0 }
 0x2a6   :  { %947 = vmatprep.subr.bf16.mxu0 %v778_v4  ;;  %v1069_v10 = vunpack.i.h.bf16 %v1065_v6  ;;  %v1066_v9 = vunpack.i.l.bf16 %v1065_v6 }
 0x2a7   :  { %948 = vmatpush3.bf16.msra.mxu0 %v770_v5 }
 0x2a9   :  { %v1070_v17 = vpop.trf.xlu0 }
 0x2aa   :  { %v1074_v11 = vunpack.i.h.bf16 %v1070_v17  ;;  %v1071_v14 = vunpack.i.l.bf16 %v1070_v17 }
 0x2ac   :  { %v771_v18 = vpack.c.bf16 %v1074_v11, %v1069_v10  ;;  %v779_v19 = vpack.c.bf16 %v1071_v14, %v1066_v9 }
 0x2ae   :  { %949 = vmatprep.subr.bf16.mxu0 %v779_v19 }
 0x2af   :  { %950 = vmatpush3.bf16.msra.mxu0 %v771_v18 }
 0x2b2   :  { %849 = vmatmul.mubr.bf16.vlgmr.msra.gmra.mrb[32].mxu0 %v806_v8 }
 0x385   :  { %v951_v21 = vpop.f32.mrb[32].mxu0 }
 0x386   :  { %v952_v23 = vpop.f32.mrb[33].mxu0 }
 0x387   :  { %v953_v12 = vadd.f32 %v952_v23, %v951_v21  ;;  %v954_v24 = vpop.f32.mrb[34].mxu0 }
 0x388   :  { %v955_v25 = vpop.f32.mrb[35].mxu0 }
 0x389   :  { %v851_v26 = vadd.f32 %v953_v12, %v790_v22 }
 0x38b   :  { %v934_v27 = vmul.f32 -1.442695, %v851_v26 }
 0x38d   :  { %1145 = vpow2.f32 %v934_v27 }
 0x397   :  { %v1146_v28 = vpop.eup %1145 }
 0x398   :  { %v859_v15 = vadd.f32 1.0, %v1146_v28 }
 0x39a   :  { %1147 = vrcp.f32 %v859_v15 }
 0x3a4   :  { %v1148_v29 = vpop.eup %1147 }
 0x3a5   :  { %862 = vst [vmem:[#allocation6] sm:$0x1] %v1148_v29 }
 0x3a6   :  { %1182 = shalt.err (!%p1179_p12)
}
 0x3a7   :  { %s1183_s29 = scalar_lea.hbm %s1489_s7, 16 }
 0x3a8   :  { %p1184_p13 = scmp.ne.s32.totalorder %s1489_s7, %s1183_s29  ;;  %p1187_p0 = scmp.lt.u32.totalorder %s1183_s29, %s1489_s7 }
 0x3aa   :  { %p1189_p1 = pnand %p1187_p0, %p1184_p13 }
 0x3ac   :  { %1192 = shalt.err (!%p1189_p1)
}
 0x3ad   :  { %872 = dma.vmem_to_hbm [thread:$0]  %s870_s24, 16, %s1489_s7, [#allocation5]  }
 0x3ae   :  { %1195 = dma.done.wait [#allocation5], 16  }
 0x3af   :  { %1196 = vsyncadd [#allocation5], 4294967280 }
 0x3b0   :  { %876 = vsyncpa [#allocation4], 1 }
 0x3b1   :  { %877 = vsyncpa [#allocation5], 1 }

</bundles_post_ra>
